<compile_context>
chip_gen: v5e
topology: v5e:2x2
jax: 0.10.0
libtpu: 0.0.40
codegen_flags: <defaults>
</compile_context>

<pallas_src>
import jax
import jax.numpy as jnp
from jax import lax
from jax.experimental import pallas as pl
from jax.experimental.pallas import tpu as pltpu


def decoder_forward(x, params):
    """x: (B, S, in_dim) float32 -> (B, S, out_dim)."""
    B, S, D = x.shape
    H = D // 4                       # LSTM hidden size per direction
    hidden = 2 * H                   # bidirectional width / linear1 size
    out_dim = params['w2'].shape[1]
    out_pad = ((out_dim + 127) // 128) * 128        # lane-dense output width

    # ---------------- wrapper-side weight packing (done once, in XLA) --------
    def perm_g(w):                   # gate cols [i, f, g, o] -> [i, f, o, g]
        return jnp.concatenate([w[:, :2 * H], w[:, 3 * H:], w[:, 2 * H:3 * H]], axis=1)

    def interleave(wf, wb):          # (K,4H)x2 -> (K,8H): [i_f i_b f_f f_b o_f o_b g_f g_b]
        K = wf.shape[0]
        return jnp.stack([wf.reshape(K, 4, H), wb.reshape(K, 4, H)],
                         axis=2).reshape(K, 8 * H)

    zD = jnp.zeros((D, 4 * H), jnp.float32)
    zH = jnp.zeros((H, 4 * H), jnp.float32)
    # Input weights: rows [:D] consume x[t] (forward cols), rows [D:] consume x[S-1-t].
    wih_aug = jnp.concatenate([interleave(perm_g(params['wih_f']), zD),
                               interleave(zD, perm_g(params['wih_b']))], axis=0)  # (2D, 8H)
    # Recurrent weights, block-diagonal over directions: rows [:H]=h_f, rows [H:]=h_b.
    whh_bd = jnp.concatenate([interleave(perm_g(params['whh_f']), zH),
                              interleave(zH, perm_g(params['whh_b']))], axis=0)   # (2H, 8H)
    b_cat = interleave(perm_g(params['b_f']), perm_g(params['b_b']))              # (1, 8H)

    w2_pad = jnp.zeros((hidden, out_pad), jnp.float32).at[:, :out_dim].set(params['w2'])
    b2_pad = jnp.zeros((1, out_pad), jnp.float32).at[:, :out_dim].set(params['b2'])

    # Time-major augmented input, flattened 2D: row t*B+b = [x[b,t] | x[b,S-1-t]].
    x_sm = jnp.transpose(x, (1, 0, 2))                                  # (S, B, D)
    x_aug = jnp.concatenate([x_sm, x_sm[::-1]], axis=-1).reshape(S * B, 2 * D)

    # ---------------------------------- kernel -------------------------------
    def kernel(x_ref, wih_ref, bih_ref, whh_ref, w1_ref, b1_ref, w2_ref, b2_ref,
               o_ref, pg_ref, y_ref):
        # 1) Hoisted input projection for BOTH directions & all steps: one matmul,
        #    biases folded in. pg row t*B+b holds forward pregates of x[t] and
        #    backward pregates of x[S-1-t], gate-interleaved columns.
        pg_ref[...] = (jnp.dot(x_ref[...], wih_ref[...],
                               preferred_element_type=jnp.float32) + bih_ref[...])

        # 2) Bidirectional recurrence: one block-diagonal matmul per step on the
        #    combined [h_f | h_b] state; 3 EUP pushes per step.
        whh = whh_ref[...]                       # loop-invariant, loaded once
        h = jnp.zeros((B, hidden), jnp.float32)
        c = jnp.zeros((B, hidden), jnp.float32)
        for t in range(S):                       # static loop -> constant row offsets
            tb = S - 1 - t
            gates = pg_ref[pl.ds(t * B, B), :] + jnp.dot(
                h, whh, preferred_element_type=jnp.float32)
            sig = jax.nn.sigmoid(gates[:, :6 * H])     # [i_f i_b f_f f_b o_f o_b]
            g = jnp.tanh(gates[:, 6 * H:])             # [g_f g_b]
            c = sig[:, 2 * H:4 * H] * c + sig[:, :2 * H] * g
            h = sig[:, 4 * H:6 * H] * jnp.tanh(c)
            y_ref[pl.ds(t * B, B), pl.ds(0, H)] = h[:, :H]    # forward out @ time t
            y_ref[pl.ds(tb * B, B), pl.ds(H, H)] = h[:, H:]   # backward out @ time S-1-t

        # 3) Head: single linear1 on the combined y, (eval) dropout = identity,
        #    LeakyReLU(0.01), linear2 into the lane-dense padded output.
        h1 = (jnp.dot(y_ref[...], w1_ref[...], preferred_element_type=jnp.float32)
              + b1_ref[...])
        h1 = jnp.where(h1 > 0, h1, 0.01 * h1)
        out = (jnp.dot(h1, w2_ref[...], preferred_element_type=jnp.float32)
               + b2_ref[...])
        o_ref[...] = out.astype(o_ref.dtype)

    vmem = pl.BlockSpec(memory_space=pltpu.MemorySpace.VMEM)
    args = (x_aug, wih_aug, b_cat, whh_bd,
            params['w1'], params['b1'], w2_pad, b2_pad)

    out2d = pl.pallas_call(
        kernel,
        out_shape=jax.ShapeDtypeStruct((S * B, out_pad), x.dtype),
        in_specs=[vmem] * len(args),
        out_specs=vmem,
        scratch_shapes=[
            pltpu.VMEM((S * B, 8 * H), jnp.float32),   # hoisted pregates (both dirs)
            pltpu.VMEM((S * B, hidden), jnp.float32),  # combined BiLSTM outputs
        ],
        compiler_params=pltpu.CompilerParams(vmem_limit_bytes=32 * 1024 * 1024),
    )(*args)

    out_sm = out2d.reshape(S, B, out_pad)[:, :, :out_dim]       # (S, B, out_dim)
    return jnp.transpose(out_sm, (1, 0, 2))                     # (B, S, out_dim)


def init_params(key, in_dim, out_dim):
    """Deterministic synthetic parameters (shapes match the PyTorch module)."""
    H = in_dim // 4                 # LSTM hidden size per direction
    hidden = in_dim // 2            # bidirectional output / linear1 size
    keys = jax.random.split(key, 12)

    def u(k, shape, fan):
        bound = 1.0 / jnp.sqrt(jnp.float32(fan))
        return jax.random.uniform(k, shape, jnp.float32, -bound, bound)

    return dict(
        # LSTM weights stored pre-transposed: (in, 4H) / (H, 4H); gate order i,f,g,o
        wih_f=u(keys[0], (in_dim, 4 * H), H),
        whh_f=u(keys[1], (H, 4 * H), H),
        b_f=u(keys[2], (1, 4 * H), H) + u(keys[3], (1, 4 * H), H),   # b_ih + b_hh
        wih_b=u(keys[4], (in_dim, 4 * H), H),
        whh_b=u(keys[5], (H, 4 * H), H),
        b_b=u(keys[6], (1, 4 * H), H) + u(keys[7], (1, 4 * H), H),
        w1=u(keys[8], (hidden, hidden), hidden),
        b1=u(keys[9], (1, hidden), hidden),
        w2=u(keys[10], (hidden, out_dim), hidden),
        b2=u(keys[11], (1, out_dim), hidden),
    )


def reference_forward(x, params):
    """Pure-JAX reference of the same math (for a correctness check)."""
    B, S, D = x.shape
    H = D // 4

    def direction(wih, whh, b, reverse):
        def step(carry, xt):
            h, c = carry
            gates = xt @ wih + h @ whh + b[0]
            i = jax.nn.sigmoid(gates[:, :H])
            f = jax.nn.sigmoid(gates[:, H:2 * H])
            g = jnp.tanh(gates[:, 2 * H:3 * H])
            o = jax.nn.sigmoid(gates[:, 3 * H:4 * H])
            c = f * c + i * g
            h = o * jnp.tanh(c)
            return (h, c), h

        xs = jnp.transpose(x, (1, 0, 2))
        if reverse:
            xs = xs[::-1]
        init = (jnp.zeros((B, H), jnp.float32), jnp.zeros((B, H), jnp.float32))
        _, ys = lax.scan(step, init, xs)
        if reverse:
            ys = ys[::-1]
        return jnp.transpose(ys, (1, 0, 2))

    yf = direction(params['wih_f'], params['whh_f'], params['b_f'], False)
    yb = direction(params['wih_b'], params['whh_b'], params['b_b'], True)
    y = jnp.concatenate([yf, yb], axis=-1)
    h1 = y @ params['w1'] + params['b1'][0]
    h1 = jnp.where(h1 > 0, h1, 0.01 * h1)
    return h1 @ params['w2'] + params['b2'][0]


if __name__ == "__main__":
    B, S, in_dim, out_dim = 2, 8, 32, 4
    key = jax.random.PRNGKey(0)
    k_x, k_p = jax.random.split(key)
    x = jax.random.normal(k_x, (B, S, in_dim), jnp.float32)
    params = init_params(k_p, in_dim, out_dim)

    out = jax.block_until_ready(decoder_forward(x, params))
    ref = jax.block_until_ready(reference_forward(x, params))

    assert out.shape == (B, S, out_dim), out.shape
    assert jnp.allclose(out, ref, atol=1e-4, rtol=1e-4), \
        f"max err {jnp.max(jnp.abs(out - ref))}"
    print("KERNEL_OK")
</pallas_src>

<mosaic_0001>
module attributes {stable_mosaic.version = 11 : i64} {
  func.func @kernel(%arg0: memref<16x64xf32, #tpu.memory_space<vmem>>, %arg1: memref<64x64xf32, #tpu.memory_space<vmem>>, %arg2: memref<1x64xf32, #tpu.memory_space<vmem>>, %arg3: memref<16x64xf32, #tpu.memory_space<vmem>>, %arg4: memref<16x16xf32, #tpu.memory_space<vmem>>, %arg5: memref<1x16xf32, #tpu.memory_space<vmem>>, %arg6: memref<16x128xf32, #tpu.memory_space<vmem>>, %arg7: memref<1x128xf32, #tpu.memory_space<vmem>>, %arg8: memref<16x128xf32, #tpu.memory_space<vmem>>, %arg9: memref<16x64xf32, #tpu.memory_space<vmem>>, %arg10: memref<16x16xf32, #tpu.memory_space<vmem>>) attributes {dimension_semantics = [], scalar_prefetch = 0 : i64, scratch_operands = 2 : i64, tpu.core_type = #tpu.core_type<tc>} {
    %c0 = arith.constant 0 : index
    %c0_0 = arith.constant 0 : index
    %0 = vector.load %arg0[%c0, %c0_0] : memref<16x64xf32, #tpu.memory_space<vmem>>, vector<16x64xf32>
    %c0_1 = arith.constant 0 : index
    %c0_2 = arith.constant 0 : index
    %1 = vector.load %arg1[%c0_1, %c0_2] : memref<64x64xf32, #tpu.memory_space<vmem>>, vector<64x64xf32>
    %cst = arith.constant dense<0.000000e+00> : vector<16x64xf32>
    %2 = tpu.matmul %0, %1, %cst {dimension_numbers = #tpu.dot_dimension_numbers<[1], [0], [0], [1], [0, 0, 1, 1], [], []>} : vector<16x64xf32>, vector<64x64xf32>, vector<16x64xf32> -> vector<16x64xf32>
    %c0_3 = arith.constant 0 : index
    %c0_4 = arith.constant 0 : index
    %3 = vector.load %arg2[%c0_3, %c0_4] : memref<1x64xf32, #tpu.memory_space<vmem>>, vector<1x64xf32>
    %4 = vector.broadcast %3 : vector<1x64xf32> to vector<16x64xf32>
    %5 = arith.addf %2, %4 : vector<16x64xf32>
    %c0_5 = arith.constant 0 : index
    %c0_6 = arith.constant 0 : index
    %6 = vector.load %arg9[%c0_5, %c0_6] : memref<16x64xf32, #tpu.memory_space<vmem>>, vector<16x64xf32>
    tpu.vector_store %arg9[%c0_5, %c0_6], %5 {strides = array<i32>} : memref<16x64xf32, #tpu.memory_space<vmem>>, vector<16x64xf32>,
    %c0_7 = arith.constant 0 : index
    %c0_8 = arith.constant 0 : index
    %7 = vector.load %arg3[%c0_7, %c0_8] : memref<16x64xf32, #tpu.memory_space<vmem>>, vector<16x64xf32>
    %cst_9 = arith.constant 0.000000e+00 : f32
    %8 = vector.broadcast %cst_9 : f32 to vector<2x16xf32>
    %cst_10 = arith.constant 0.000000e+00 : f32
    %9 = vector.broadcast %cst_10 : f32 to vector<2x16xf32>
    %c0_11 = arith.constant 0 : index
    %c0_12 = arith.constant 0 : index
    %10 = vector.load %arg9[%c0_11, %c0_12] : memref<16x64xf32, #tpu.memory_space<vmem>>, vector<2x64xf32>
    %cst_13 = arith.constant dense<0.000000e+00> : vector<2x64xf32>
    %11 = tpu.matmul %8, %7, %cst_13 {dimension_numbers = #tpu.dot_dimension_numbers<[1], [0], [0], [1], [0, 0, 1, 1], [], []>} : vector<2x16xf32>, vector<16x64xf32>, vector<2x64xf32> -> vector<2x64xf32>
    %12 = arith.addf %10, %11 : vector<2x64xf32>
    %13 = vector.extract_strided_slice %12 {offsets = [0, 0], sizes = [2, 48], strides = [1, 1]} : vector<2x64xf32> to vector<2x48xf32>
    %14 = arith.negf %13 : vector<2x48xf32>
    %15 = math.exp %14 : vector<2x48xf32>
    %cst_14 = arith.constant 1.000000e+00 : f32
    %16 = vector.broadcast %cst_14 : f32 to vector<2x48xf32>
    %17 = arith.addf %16, %15 : vector<2x48xf32>
    %18 = arith.divf %16, %17 : vector<2x48xf32>
    %19 = vector.extract_strided_slice %12 {offsets = [0, 48], sizes = [2, 16], strides = [1, 1]} : vector<2x64xf32> to vector<2x16xf32>
    %20 = math.tanh %19 : vector<2x16xf32>
    %21 = vector.extract_strided_slice %18 {offsets = [0, 16], sizes = [2, 16], strides = [1, 1]} : vector<2x48xf32> to vector<2x16xf32>
    %22 = arith.mulf %21, %9 : vector<2x16xf32>
    %23 = vector.extract_strided_slice %18 {offsets = [0, 0], sizes = [2, 16], strides = [1, 1]} : vector<2x48xf32> to vector<2x16xf32>
    %24 = arith.mulf %23, %20 : vector<2x16xf32>
    %25 = arith.addf %22, %24 : vector<2x16xf32>
    %26 = vector.extract_strided_slice %18 {offsets = [0, 32], sizes = [2, 16], strides = [1, 1]} : vector<2x48xf32> to vector<2x16xf32>
    %27 = math.tanh %25 : vector<2x16xf32>
    %28 = arith.mulf %26, %27 : vector<2x16xf32>
    %29 = vector.extract_strided_slice %28 {offsets = [0, 0], sizes = [2, 8], strides = [1, 1]} : vector<2x16xf32> to vector<2x8xf32>
    %c0_15 = arith.constant 0 : index
    %c0_16 = arith.constant 0 : index
    %30 = vector.load %arg10[%c0_15, %c0_16] : memref<16x16xf32, #tpu.memory_space<vmem>>, vector<2x8xf32>
    tpu.vector_store %arg10[%c0_15, %c0_16], %29 {strides = array<i32>} : memref<16x16xf32, #tpu.memory_space<vmem>>, vector<2x8xf32>,
    %31 = vector.extract_strided_slice %28 {offsets = [0, 8], sizes = [2, 8], strides = [1, 1]} : vector<2x16xf32> to vector<2x8xf32>
    %c14 = arith.constant 14 : index
    %c8 = arith.constant 8 : index
    %32 = vector.load %arg10[%c14, %c8] : memref<16x16xf32, #tpu.memory_space<vmem>>, vector<2x8xf32>
    tpu.vector_store %arg10[%c14, %c8], %31 {strides = array<i32>} : memref<16x16xf32, #tpu.memory_space<vmem>>, vector<2x8xf32>,
    %c2 = arith.constant 2 : index
    %c0_17 = arith.constant 0 : index
    %33 = vector.load %arg9[%c2, %c0_17] : memref<16x64xf32, #tpu.memory_space<vmem>>, vector<2x64xf32>
    %cst_18 = arith.constant dense<0.000000e+00> : vector<2x64xf32>
    %34 = tpu.matmul %28, %7, %cst_18 {dimension_numbers = #tpu.dot_dimension_numbers<[1], [0], [0], [1], [0, 0, 1, 1], [], []>} : vector<2x16xf32>, vector<16x64xf32>, vector<2x64xf32> -> vector<2x64xf32>
    %35 = arith.addf %33, %34 : vector<2x64xf32>
    %36 = vector.extract_strided_slice %35 {offsets = [0, 0], sizes = [2, 48], strides = [1, 1]} : vector<2x64xf32> to vector<2x48xf32>
    %37 = arith.negf %36 : vector<2x48xf32>
    %38 = math.exp %37 : vector<2x48xf32>
    %cst_19 = arith.constant 1.000000e+00 : f32
    %39 = vector.broadcast %cst_19 : f32 to vector<2x48xf32>
    %40 = arith.addf %39, %38 : vector<2x48xf32>
    %41 = arith.divf %39, %40 : vector<2x48xf32>
    %42 = vector.extract_strided_slice %35 {offsets = [0, 48], sizes = [2, 16], strides = [1, 1]} : vector<2x64xf32> to vector<2x16xf32>
    %43 = math.tanh %42 : vector<2x16xf32>
    %44 = vector.extract_strided_slice %41 {offsets = [0, 16], sizes = [2, 16], strides = [1, 1]} : vector<2x48xf32> to vector<2x16xf32>
    %45 = arith.mulf %44, %25 : vector<2x16xf32>
    %46 = vector.extract_strided_slice %41 {offsets = [0, 0], sizes = [2, 16], strides = [1, 1]} : vector<2x48xf32> to vector<2x16xf32>
    %47 = arith.mulf %46, %43 : vector<2x16xf32>
    %48 = arith.addf %45, %47 : vector<2x16xf32>
    %49 = vector.extract_strided_slice %41 {offsets = [0, 32], sizes = [2, 16], strides = [1, 1]} : vector<2x48xf32> to vector<2x16xf32>
    %50 = math.tanh %48 : vector<2x16xf32>
    %51 = arith.mulf %49, %50 : vector<2x16xf32>
    %52 = vector.extract_strided_slice %51 {offsets = [0, 0], sizes = [2, 8], strides = [1, 1]} : vector<2x16xf32> to vector<2x8xf32>
    %c2_20 = arith.constant 2 : index
    %c0_21 = arith.constant 0 : index
    %53 = vector.load %arg10[%c2_20, %c0_21] : memref<16x16xf32, #tpu.memory_space<vmem>>, vector<2x8xf32>
    tpu.vector_store %arg10[%c2_20, %c0_21], %52 {strides = array<i32>} : memref<16x16xf32, #tpu.memory_space<vmem>>, vector<2x8xf32>,
    %54 = vector.extract_strided_slice %51 {offsets = [0, 8], sizes = [2, 8], strides = [1, 1]} : vector<2x16xf32> to vector<2x8xf32>
    %c12 = arith.constant 12 : index
    %c8_22 = arith.constant 8 : index
    %55 = vector.load %arg10[%c12, %c8_22] : memref<16x16xf32, #tpu.memory_space<vmem>>, vector<2x8xf32>
    tpu.vector_store %arg10[%c12, %c8_22], %54 {strides = array<i32>} : memref<16x16xf32, #tpu.memory_space<vmem>>, vector<2x8xf32>,
    %c4 = arith.constant 4 : index
    %c0_23 = arith.constant 0 : index
    %56 = vector.load %arg9[%c4, %c0_23] : memref<16x64xf32, #tpu.memory_space<vmem>>, vector<2x64xf32>
    %cst_24 = arith.constant dense<0.000000e+00> : vector<2x64xf32>
    %57 = tpu.matmul %51, %7, %cst_24 {dimension_numbers = #tpu.dot_dimension_numbers<[1], [0], [0], [1], [0, 0, 1, 1], [], []>} : vector<2x16xf32>, vector<16x64xf32>, vector<2x64xf32> -> vector<2x64xf32>
    %58 = arith.addf %56, %57 : vector<2x64xf32>
    %59 = vector.extract_strided_slice %58 {offsets = [0, 0], sizes = [2, 48], strides = [1, 1]} : vector<2x64xf32> to vector<2x48xf32>
    %60 = arith.negf %59 : vector<2x48xf32>
    %61 = math.exp %60 : vector<2x48xf32>
    %cst_25 = arith.constant 1.000000e+00 : f32
    %62 = vector.broadcast %cst_25 : f32 to vector<2x48xf32>
    %63 = arith.addf %62, %61 : vector<2x48xf32>
    %64 = arith.divf %62, %63 : vector<2x48xf32>
    %65 = vector.extract_strided_slice %58 {offsets = [0, 48], sizes = [2, 16], strides = [1, 1]} : vector<2x64xf32> to vector<2x16xf32>
    %66 = math.tanh %65 : vector<2x16xf32>
    %67 = vector.extract_strided_slice %64 {offsets = [0, 16], sizes = [2, 16], strides = [1, 1]} : vector<2x48xf32> to vector<2x16xf32>
    %68 = arith.mulf %67, %48 : vector<2x16xf32>
    %69 = vector.extract_strided_slice %64 {offsets = [0, 0], sizes = [2, 16], strides = [1, 1]} : vector<2x48xf32> to vector<2x16xf32>
    %70 = arith.mulf %69, %66 : vector<2x16xf32>
    %71 = arith.addf %68, %70 : vector<2x16xf32>
    %72 = vector.extract_strided_slice %64 {offsets = [0, 32], sizes = [2, 16], strides = [1, 1]} : vector<2x48xf32> to vector<2x16xf32>
    %73 = math.tanh %71 : vector<2x16xf32>
    %74 = arith.mulf %72, %73 : vector<2x16xf32>
    %75 = vector.extract_strided_slice %74 {offsets = [0, 0], sizes = [2, 8], strides = [1, 1]} : vector<2x16xf32> to vector<2x8xf32>
    %c4_26 = arith.constant 4 : index
    %c0_27 = arith.constant 0 : index
    %76 = vector.load %arg10[%c4_26, %c0_27] : memref<16x16xf32, #tpu.memory_space<vmem>>, vector<2x8xf32>
    tpu.vector_store %arg10[%c4_26, %c0_27], %75 {strides = array<i32>} : memref<16x16xf32, #tpu.memory_space<vmem>>, vector<2x8xf32>,
    %77 = vector.extract_strided_slice %74 {offsets = [0, 8], sizes = [2, 8], strides = [1, 1]} : vector<2x16xf32> to vector<2x8xf32>
    %c10 = arith.constant 10 : index
    %c8_28 = arith.constant 8 : index
    %78 = vector.load %arg10[%c10, %c8_28] : memref<16x16xf32, #tpu.memory_space<vmem>>, vector<2x8xf32>
    tpu.vector_store %arg10[%c10, %c8_28], %77 {strides = array<i32>} : memref<16x16xf32, #tpu.memory_space<vmem>>, vector<2x8xf32>,
    %c6 = arith.constant 6 : index
    %c0_29 = arith.constant 0 : index
    %79 = vector.load %arg9[%c6, %c0_29] : memref<16x64xf32, #tpu.memory_space<vmem>>, vector<2x64xf32>
    %cst_30 = arith.constant dense<0.000000e+00> : vector<2x64xf32>
    %80 = tpu.matmul %74, %7, %cst_30 {dimension_numbers = #tpu.dot_dimension_numbers<[1], [0], [0], [1], [0, 0, 1, 1], [], []>} : vector<2x16xf32>, vector<16x64xf32>, vector<2x64xf32> -> vector<2x64xf32>
    %81 = arith.addf %79, %80 : vector<2x64xf32>
    %82 = vector.extract_strided_slice %81 {offsets = [0, 0], sizes = [2, 48], strides = [1, 1]} : vector<2x64xf32> to vector<2x48xf32>
    %83 = arith.negf %82 : vector<2x48xf32>
    %84 = math.exp %83 : vector<2x48xf32>
    %cst_31 = arith.constant 1.000000e+00 : f32
    %85 = vector.broadcast %cst_31 : f32 to vector<2x48xf32>
    %86 = arith.addf %85, %84 : vector<2x48xf32>
    %87 = arith.divf %85, %86 : vector<2x48xf32>
    %88 = vector.extract_strided_slice %81 {offsets = [0, 48], sizes = [2, 16], strides = [1, 1]} : vector<2x64xf32> to vector<2x16xf32>
    %89 = math.tanh %88 : vector<2x16xf32>
    %90 = vector.extract_strided_slice %87 {offsets = [0, 16], sizes = [2, 16], strides = [1, 1]} : vector<2x48xf32> to vector<2x16xf32>
    %91 = arith.mulf %90, %71 : vector<2x16xf32>
    %92 = vector.extract_strided_slice %87 {offsets = [0, 0], sizes = [2, 16], strides = [1, 1]} : vector<2x48xf32> to vector<2x16xf32>
    %93 = arith.mulf %92, %89 : vector<2x16xf32>
    %94 = arith.addf %91, %93 : vector<2x16xf32>
    %95 = vector.extract_strided_slice %87 {offsets = [0, 32], sizes = [2, 16], strides = [1, 1]} : vector<2x48xf32> to vector<2x16xf32>
    %96 = math.tanh %94 : vector<2x16xf32>
    %97 = arith.mulf %95, %96 : vector<2x16xf32>
    %98 = vector.extract_strided_slice %97 {offsets = [0, 0], sizes = [2, 8], strides = [1, 1]} : vector<2x16xf32> to vector<2x8xf32>
    %c6_32 = arith.constant 6 : index
    %c0_33 = arith.constant 0 : index
    %99 = vector.load %arg10[%c6_32, %c0_33] : memref<16x16xf32, #tpu.memory_space<vmem>>, vector<2x8xf32>
    tpu.vector_store %arg10[%c6_32, %c0_33], %98 {strides = array<i32>} : memref<16x16xf32, #tpu.memory_space<vmem>>, vector<2x8xf32>,
    %100 = vector.extract_strided_slice %97 {offsets = [0, 8], sizes = [2, 8], strides = [1, 1]} : vector<2x16xf32> to vector<2x8xf32>
    %c8_34 = arith.constant 8 : index
    %c8_35 = arith.constant 8 : index
    %101 = vector.load %arg10[%c8_34, %c8_35] : memref<16x16xf32, #tpu.memory_space<vmem>>, vector<2x8xf32>
    tpu.vector_store %arg10[%c8_34, %c8_35], %100 {strides = array<i32>} : memref<16x16xf32, #tpu.memory_space<vmem>>, vector<2x8xf32>,
    %c8_36 = arith.constant 8 : index
    %c0_37 = arith.constant 0 : index
    %102 = vector.load %arg9[%c8_36, %c0_37] : memref<16x64xf32, #tpu.memory_space<vmem>>, vector<2x64xf32>
    %cst_38 = arith.constant dense<0.000000e+00> : vector<2x64xf32>
    %103 = tpu.matmul %97, %7, %cst_38 {dimension_numbers = #tpu.dot_dimension_numbers<[1], [0], [0], [1], [0, 0, 1, 1], [], []>} : vector<2x16xf32>, vector<16x64xf32>, vector<2x64xf32> -> vector<2x64xf32>
    %104 = arith.addf %102, %103 : vector<2x64xf32>
    %105 = vector.extract_strided_slice %104 {offsets = [0, 0], sizes = [2, 48], strides = [1, 1]} : vector<2x64xf32> to vector<2x48xf32>
    %106 = arith.negf %105 : vector<2x48xf32>
    %107 = math.exp %106 : vector<2x48xf32>
    %cst_39 = arith.constant 1.000000e+00 : f32
    %108 = vector.broadcast %cst_39 : f32 to vector<2x48xf32>
    %109 = arith.addf %108, %107 : vector<2x48xf32>
    %110 = arith.divf %108, %109 : vector<2x48xf32>
    %111 = vector.extract_strided_slice %104 {offsets = [0, 48], sizes = [2, 16], strides = [1, 1]} : vector<2x64xf32> to vector<2x16xf32>
    %112 = math.tanh %111 : vector<2x16xf32>
    %113 = vector.extract_strided_slice %110 {offsets = [0, 16], sizes = [2, 16], strides = [1, 1]} : vector<2x48xf32> to vector<2x16xf32>
    %114 = arith.mulf %113, %94 : vector<2x16xf32>
    %115 = vector.extract_strided_slice %110 {offsets = [0, 0], sizes = [2, 16], strides = [1, 1]} : vector<2x48xf32> to vector<2x16xf32>
    %116 = arith.mulf %115, %112 : vector<2x16xf32>
    %117 = arith.addf %114, %116 : vector<2x16xf32>
    %118 = vector.extract_strided_slice %110 {offsets = [0, 32], sizes = [2, 16], strides = [1, 1]} : vector<2x48xf32> to vector<2x16xf32>
    %119 = math.tanh %117 : vector<2x16xf32>
    %120 = arith.mulf %118, %119 : vector<2x16xf32>
    %121 = vector.extract_strided_slice %120 {offsets = [0, 0], sizes = [2, 8], strides = [1, 1]} : vector<2x16xf32> to vector<2x8xf32>
    %c8_40 = arith.constant 8 : index
    %c0_41 = arith.constant 0 : index
    %122 = vector.load %arg10[%c8_40, %c0_41] : memref<16x16xf32, #tpu.memory_space<vmem>>, vector<2x8xf32>
    tpu.vector_store %arg10[%c8_40, %c0_41], %121 {strides = array<i32>} : memref<16x16xf32, #tpu.memory_space<vmem>>, vector<2x8xf32>,
    %123 = vector.extract_strided_slice %120 {offsets = [0, 8], sizes = [2, 8], strides = [1, 1]} : vector<2x16xf32> to vector<2x8xf32>
    %c6_42 = arith.constant 6 : index
    %c8_43 = arith.constant 8 : index
    %124 = vector.load %arg10[%c6_42, %c8_43] : memref<16x16xf32, #tpu.memory_space<vmem>>, vector<2x8xf32>
    tpu.vector_store %arg10[%c6_42, %c8_43], %123 {strides = array<i32>} : memref<16x16xf32, #tpu.memory_space<vmem>>, vector<2x8xf32>,
    %c10_44 = arith.constant 10 : index
    %c0_45 = arith.constant 0 : index
    %125 = vector.load %arg9[%c10_44, %c0_45] : memref<16x64xf32, #tpu.memory_space<vmem>>, vector<2x64xf32>
    %cst_46 = arith.constant dense<0.000000e+00> : vector<2x64xf32>
    %126 = tpu.matmul %120, %7, %cst_46 {dimension_numbers = #tpu.dot_dimension_numbers<[1], [0], [0], [1], [0, 0, 1, 1], [], []>} : vector<2x16xf32>, vector<16x64xf32>, vector<2x64xf32> -> vector<2x64xf32>
    %127 = arith.addf %125, %126 : vector<2x64xf32>
    %128 = vector.extract_strided_slice %127 {offsets = [0, 0], sizes = [2, 48], strides = [1, 1]} : vector<2x64xf32> to vector<2x48xf32>
    %129 = arith.negf %128 : vector<2x48xf32>
    %130 = math.exp %129 : vector<2x48xf32>
    %cst_47 = arith.constant 1.000000e+00 : f32
    %131 = vector.broadcast %cst_47 : f32 to vector<2x48xf32>
    %132 = arith.addf %131, %130 : vector<2x48xf32>
    %133 = arith.divf %131, %132 : vector<2x48xf32>
    %134 = vector.extract_strided_slice %127 {offsets = [0, 48], sizes = [2, 16], strides = [1, 1]} : vector<2x64xf32> to vector<2x16xf32>
    %135 = math.tanh %134 : vector<2x16xf32>
    %136 = vector.extract_strided_slice %133 {offsets = [0, 16], sizes = [2, 16], strides = [1, 1]} : vector<2x48xf32> to vector<2x16xf32>
    %137 = arith.mulf %136, %117 : vector<2x16xf32>
    %138 = vector.extract_strided_slice %133 {offsets = [0, 0], sizes = [2, 16], strides = [1, 1]} : vector<2x48xf32> to vector<2x16xf32>
    %139 = arith.mulf %138, %135 : vector<2x16xf32>
    %140 = arith.addf %137, %139 : vector<2x16xf32>
    %141 = vector.extract_strided_slice %133 {offsets = [0, 32], sizes = [2, 16], strides = [1, 1]} : vector<2x48xf32> to vector<2x16xf32>
    %142 = math.tanh %140 : vector<2x16xf32>
    %143 = arith.mulf %141, %142 : vector<2x16xf32>
    %144 = vector.extract_strided_slice %143 {offsets = [0, 0], sizes = [2, 8], strides = [1, 1]} : vector<2x16xf32> to vector<2x8xf32>
    %c10_48 = arith.constant 10 : index
    %c0_49 = arith.constant 0 : index
    %145 = vector.load %arg10[%c10_48, %c0_49] : memref<16x16xf32, #tpu.memory_space<vmem>>, vector<2x8xf32>
    tpu.vector_store %arg10[%c10_48, %c0_49], %144 {strides = array<i32>} : memref<16x16xf32, #tpu.memory_space<vmem>>, vector<2x8xf32>,
    %146 = vector.extract_strided_slice %143 {offsets = [0, 8], sizes = [2, 8], strides = [1, 1]} : vector<2x16xf32> to vector<2x8xf32>
    %c4_50 = arith.constant 4 : index
    %c8_51 = arith.constant 8 : index
    %147 = vector.load %arg10[%c4_50, %c8_51] : memref<16x16xf32, #tpu.memory_space<vmem>>, vector<2x8xf32>
    tpu.vector_store %arg10[%c4_50, %c8_51], %146 {strides = array<i32>} : memref<16x16xf32, #tpu.memory_space<vmem>>, vector<2x8xf32>,
    %c12_52 = arith.constant 12 : index
    %c0_53 = arith.constant 0 : index
    %148 = vector.load %arg9[%c12_52, %c0_53] : memref<16x64xf32, #tpu.memory_space<vmem>>, vector<2x64xf32>
    %cst_54 = arith.constant dense<0.000000e+00> : vector<2x64xf32>
    %149 = tpu.matmul %143, %7, %cst_54 {dimension_numbers = #tpu.dot_dimension_numbers<[1], [0], [0], [1], [0, 0, 1, 1], [], []>} : vector<2x16xf32>, vector<16x64xf32>, vector<2x64xf32> -> vector<2x64xf32>
    %150 = arith.addf %148, %149 : vector<2x64xf32>
    %151 = vector.extract_strided_slice %150 {offsets = [0, 0], sizes = [2, 48], strides = [1, 1]} : vector<2x64xf32> to vector<2x48xf32>
    %152 = arith.negf %151 : vector<2x48xf32>
    %153 = math.exp %152 : vector<2x48xf32>
    %cst_55 = arith.constant 1.000000e+00 : f32
    %154 = vector.broadcast %cst_55 : f32 to vector<2x48xf32>
    %155 = arith.addf %154, %153 : vector<2x48xf32>
    %156 = arith.divf %154, %155 : vector<2x48xf32>
    %157 = vector.extract_strided_slice %150 {offsets = [0, 48], sizes = [2, 16], strides = [1, 1]} : vector<2x64xf32> to vector<2x16xf32>
    %158 = math.tanh %157 : vector<2x16xf32>
    %159 = vector.extract_strided_slice %156 {offsets = [0, 16], sizes = [2, 16], strides = [1, 1]} : vector<2x48xf32> to vector<2x16xf32>
    %160 = arith.mulf %159, %140 : vector<2x16xf32>
    %161 = vector.extract_strided_slice %156 {offsets = [0, 0], sizes = [2, 16], strides = [1, 1]} : vector<2x48xf32> to vector<2x16xf32>
    %162 = arith.mulf %161, %158 : vector<2x16xf32>
    %163 = arith.addf %160, %162 : vector<2x16xf32>
    %164 = vector.extract_strided_slice %156 {offsets = [0, 32], sizes = [2, 16], strides = [1, 1]} : vector<2x48xf32> to vector<2x16xf32>
    %165 = math.tanh %163 : vector<2x16xf32>
    %166 = arith.mulf %164, %165 : vector<2x16xf32>
    %167 = vector.extract_strided_slice %166 {offsets = [0, 0], sizes = [2, 8], strides = [1, 1]} : vector<2x16xf32> to vector<2x8xf32>
    %c12_56 = arith.constant 12 : index
    %c0_57 = arith.constant 0 : index
    %168 = vector.load %arg10[%c12_56, %c0_57] : memref<16x16xf32, #tpu.memory_space<vmem>>, vector<2x8xf32>
    tpu.vector_store %arg10[%c12_56, %c0_57], %167 {strides = array<i32>} : memref<16x16xf32, #tpu.memory_space<vmem>>, vector<2x8xf32>,
    %169 = vector.extract_strided_slice %166 {offsets = [0, 8], sizes = [2, 8], strides = [1, 1]} : vector<2x16xf32> to vector<2x8xf32>
    %c2_58 = arith.constant 2 : index
    %c8_59 = arith.constant 8 : index
    %170 = vector.load %arg10[%c2_58, %c8_59] : memref<16x16xf32, #tpu.memory_space<vmem>>, vector<2x8xf32>
    tpu.vector_store %arg10[%c2_58, %c8_59], %169 {strides = array<i32>} : memref<16x16xf32, #tpu.memory_space<vmem>>, vector<2x8xf32>,
    %c14_60 = arith.constant 14 : index
    %c0_61 = arith.constant 0 : index
    %171 = vector.load %arg9[%c14_60, %c0_61] : memref<16x64xf32, #tpu.memory_space<vmem>>, vector<2x64xf32>
    %cst_62 = arith.constant dense<0.000000e+00> : vector<2x64xf32>
    %172 = tpu.matmul %166, %7, %cst_62 {dimension_numbers = #tpu.dot_dimension_numbers<[1], [0], [0], [1], [0, 0, 1, 1], [], []>} : vector<2x16xf32>, vector<16x64xf32>, vector<2x64xf32> -> vector<2x64xf32>
    %173 = arith.addf %171, %172 : vector<2x64xf32>
    %174 = vector.extract_strided_slice %173 {offsets = [0, 0], sizes = [2, 48], strides = [1, 1]} : vector<2x64xf32> to vector<2x48xf32>
    %175 = arith.negf %174 : vector<2x48xf32>
    %176 = math.exp %175 : vector<2x48xf32>
    %cst_63 = arith.constant 1.000000e+00 : f32
    %177 = vector.broadcast %cst_63 : f32 to vector<2x48xf32>
    %178 = arith.addf %177, %176 : vector<2x48xf32>
    %179 = arith.divf %177, %178 : vector<2x48xf32>
    %180 = vector.extract_strided_slice %173 {offsets = [0, 48], sizes = [2, 16], strides = [1, 1]} : vector<2x64xf32> to vector<2x16xf32>
    %181 = math.tanh %180 : vector<2x16xf32>
    %182 = vector.extract_strided_slice %179 {offsets = [0, 16], sizes = [2, 16], strides = [1, 1]} : vector<2x48xf32> to vector<2x16xf32>
    %183 = arith.mulf %182, %163 : vector<2x16xf32>
    %184 = vector.extract_strided_slice %179 {offsets = [0, 0], sizes = [2, 16], strides = [1, 1]} : vector<2x48xf32> to vector<2x16xf32>
    %185 = arith.mulf %184, %181 : vector<2x16xf32>
    %186 = arith.addf %183, %185 : vector<2x16xf32>
    %187 = vector.extract_strided_slice %179 {offsets = [0, 32], sizes = [2, 16], strides = [1, 1]} : vector<2x48xf32> to vector<2x16xf32>
    %188 = math.tanh %186 : vector<2x16xf32>
    %189 = arith.mulf %187, %188 : vector<2x16xf32>
    %190 = vector.extract_strided_slice %189 {offsets = [0, 0], sizes = [2, 8], strides = [1, 1]} : vector<2x16xf32> to vector<2x8xf32>
    %c14_64 = arith.constant 14 : index
    %c0_65 = arith.constant 0 : index
    %191 = vector.load %arg10[%c14_64, %c0_65] : memref<16x16xf32, #tpu.memory_space<vmem>>, vector<2x8xf32>
    tpu.vector_store %arg10[%c14_64, %c0_65], %190 {strides = array<i32>} : memref<16x16xf32, #tpu.memory_space<vmem>>, vector<2x8xf32>,
    %192 = vector.extract_strided_slice %189 {offsets = [0, 8], sizes = [2, 8], strides = [1, 1]} : vector<2x16xf32> to vector<2x8xf32>
    %c0_66 = arith.constant 0 : index
    %c8_67 = arith.constant 8 : index
    %193 = vector.load %arg10[%c0_66, %c8_67] : memref<16x16xf32, #tpu.memory_space<vmem>>, vector<2x8xf32>
    tpu.vector_store %arg10[%c0_66, %c8_67], %192 {strides = array<i32>} : memref<16x16xf32, #tpu.memory_space<vmem>>, vector<2x8xf32>,
    %c0_68 = arith.constant 0 : index
    %c0_69 = arith.constant 0 : index
    %194 = vector.load %arg10[%c0_68, %c0_69] : memref<16x16xf32, #tpu.memory_space<vmem>>, vector<16x16xf32>
    %c0_70 = arith.constant 0 : index
    %c0_71 = arith.constant 0 : index
    %195 = vector.load %arg4[%c0_70, %c0_71] : memref<16x16xf32, #tpu.memory_space<vmem>>, vector<16x16xf32>
    %cst_72 = arith.constant dense<0.000000e+00> : vector<16x16xf32>
    %196 = tpu.matmul %194, %195, %cst_72 {dimension_numbers = #tpu.dot_dimension_numbers<[1], [0], [0], [1], [0, 0, 1, 1], [], []>} : vector<16x16xf32>, vector<16x16xf32>, vector<16x16xf32> -> vector<16x16xf32>
    %c0_73 = arith.constant 0 : index
    %c0_74 = arith.constant 0 : index
    %197 = vector.load %arg5[%c0_73, %c0_74] : memref<1x16xf32, #tpu.memory_space<vmem>>, vector<1x16xf32>
    %198 = vector.broadcast %197 : vector<1x16xf32> to vector<16x16xf32>
    %199 = arith.addf %196, %198 : vector<16x16xf32>
    %cst_75 = arith.constant 0.000000e+00 : f32
    %200 = vector.broadcast %cst_75 : f32 to vector<16x16xf32>
    %201 = arith.cmpf ogt, %199, %200 : vector<16x16xf32>
    %cst_76 = arith.constant 0.00999999977 : f32
    %202 = vector.broadcast %cst_76 : f32 to vector<16x16xf32>
    %203 = arith.mulf %202, %199 : vector<16x16xf32>
    %204 = arith.select %201, %199, %203 : vector<16x16xi1>, vector<16x16xf32>
    %c0_77 = arith.constant 0 : index
    %c0_78 = arith.constant 0 : index
    %205 = vector.load %arg6[%c0_77, %c0_78] : memref<16x128xf32, #tpu.memory_space<vmem>>, vector<16x128xf32>
    %cst_79 = arith.constant dense<0.000000e+00> : vector<16x128xf32>
    %206 = tpu.matmul %204, %205, %cst_79 {dimension_numbers = #tpu.dot_dimension_numbers<[1], [0], [0], [1], [0, 0, 1, 1], [], []>} : vector<16x16xf32>, vector<16x128xf32>, vector<16x128xf32> -> vector<16x128xf32>
    %c0_80 = arith.constant 0 : index
    %c0_81 = arith.constant 0 : index
    %207 = vector.load %arg7[%c0_80, %c0_81] : memref<1x128xf32, #tpu.memory_space<vmem>>, vector<1x128xf32>
    %208 = vector.broadcast %207 : vector<1x128xf32> to vector<16x128xf32>
    %209 = arith.addf %206, %208 : vector<16x128xf32>
    %c0_82 = arith.constant 0 : index
    %c0_83 = arith.constant 0 : index
    %210 = vector.load %arg8[%c0_82, %c0_83] : memref<16x128xf32, #tpu.memory_space<vmem>>, vector<16x128xf32>
    tpu.vector_store %arg8[%c0_82, %c0_83], %209 {strides = array<i32>} : memref<16x128xf32, #tpu.memory_space<vmem>>, vector<16x128xf32>,
    return
  }
}

</mosaic_0001>

<bundles_post_ra>
// kernel: tpu_custom_call.1
= control target key start
LH: loop header
LB: loop body
LE: loop exit
PB: predicated region body
PF: predicated region fallthrough
CT: control target
= control target key end

     0   :  { %13 = vsyncpa [#allocation5], 0  ;;  %s1238_s0 = inlined_call_operand.hbm [shape: f32[16,64], index: 0, kind: input, shape index: {}]   ;;  %s1239_s1 = inlined_call_operand.hbm [shape: f32[64,64], index: 1, kind: input, shape index: {}]   ;;  %s1240_s2 = inlined_call_operand.vmem [shape: f32[1,64], index: 2, kind: input, shape index: {}]   ;;  %s1241_s3 = inlined_call_operand.hbm [shape: f32[16,64], index: 3, kind: input, shape index: {}]   ;;  %s1242_s4 = inlined_call_operand.hbm [shape: f32[16,16], index: 4, kind: input, shape index: {}]   ;;  %s1243_s5 = inlined_call_operand.vmem [shape: f32[1,16], index: 5, kind: input, shape index: {}]   ;;  %s1244_s6 = inlined_call_operand.hbm [shape: f32[16,128], index: 6, kind: input, shape index: {}]   ;;  %s1245_s7 = inlined_call_operand.vmem [shape: f32[1,128], index: 7, kind: input, shape index: {}]   ;;  %s1246_s8 = inlined_call_operand.hbm [shape: f32[16,128], index: 8, kind: output, shape index: {}]  }
   0x1   :  { %14 = vsyncpa [#allocation8], 0 }
   0x2   :  { %15 = vsyncpa [#allocation11], 0 }
   0x3   :  { %16 = vsyncpa [#allocation6], 0  ;;  %s34_s29 = sshll.u32 %s1239_s1, 4  ;;  %s1049_s30 = smov [#allocation7]   ;;  %s35_s29 = int_to_ptr.hbm [resolvable:$true] %s34_s29 }
   0x4   :  { %s36_s9 = sshll.u32 %s1049_s30, 4  ;;  %s62_s12 = sshll.u32 %s1242_s4, 4  ;;  %s37_s9 = int_to_ptr.vmem [resolvable:$true] %s36_s9  ;;  %s63_s12 = int_to_ptr.hbm [resolvable:$true] %s62_s12 }
   0x5   :  { %s1050_s13 = smov 128   ;;  %s1051_s14 = smov 8  }
   0x6   :  { %42 = dma.hbm_to_vmem [thread:$0]  %s35_s29, 1024, %s37_s9, [#allocation8], %s1050_s13, %s1050_s13, %s1051_s14  }
   0x7   :  { %s1052_s15 = smov [#allocation10]   ;;  %s21_s1 = sshll.u32 %s1238_s0, 4  ;;  %s22_s1 = int_to_ptr.hbm [resolvable:$true] %s21_s1 }
   0x8   :  { %s64_s16 = sshll.u32 %s1052_s15, 4  ;;  %s49_s20 = sshll.u32 %s1241_s3, 4  ;;  %s65_s16 = int_to_ptr.vmem [resolvable:$true] %s64_s16  ;;  %s50_s20 = int_to_ptr.hbm [resolvable:$true] %s49_s20 }
   0x9   :  { %70 = dma.hbm_to_vmem [thread:$0]  %s63_s12, 256, %s65_s16, [#allocation11], %s1050_s13, %s1050_s13, %s1051_s14  }
   0xa   :  { %s1053_s21 = smov [#allocation4]   ;;  %s1054_s23 = smov [#allocation9]  }
   0xb   :  { %s23_s22 = sshll.u32 %s1053_s21, 4  ;;  %s51_s0 = sshll.u32 %s1054_s23, 4  ;;  %s24_s22 = int_to_ptr.vmem [resolvable:$true] %s23_s22  ;;  %s52_s0 = int_to_ptr.vmem [resolvable:$true] %s51_s0 }
   0xc   :  { %29 = dma.hbm_to_vmem [thread:$0]  %s22_s1, 256, %s24_s22, [#allocation5], %s1050_s13, %s1050_s13, %s1051_s14  }
   0xd   :  { %s77_s26 = sshll.u32 %s1244_s6, 4  ;;  %s1055_s3 = smov [#allocation12]   ;;  %s78_s26 = int_to_ptr.hbm [resolvable:$true] %s77_s26 }
   0xe   :  { %57 = dma.hbm_to_vmem [thread:$0]  %s50_s20, 256, %s52_s0, [#allocation8], %s1050_s13, %s1050_s13, %s1051_s14  }
   0xf   :  { %s79_s27 = sshll.u32 %s1055_s3, 4  ;;  %s80_s27 = int_to_ptr.vmem [resolvable:$true] %s79_s27 }
  0x10   :  { %85 = dma.hbm_to_vmem [thread:$0]  %s78_s26, 256, %s80_s27, [#allocation11], %s1050_s13, %s1050_s13, %s1051_s14  }
  0x11   :  { %1041 = dma.done.wait [#allocation5], 256  }
  0x12   :  { %1042 = vsyncadd [#allocation5], 4294967040 }
  0x13   :  { %1043 = dma.done.wait [#allocation8], 1280  }
  0x14   :  { %1044 = vsyncadd [#allocation8], 4294966016 }
  0x15   :  { %1045 = dma.done.wait [#allocation11], 512  }
  0x16   :  { %1046 = vsyncadd [#allocation11], 4294966784  ;;  %v117_v0 = vld [vmem:[#allocation7 + $0x38] sm:$0xff]  ;;  %v116_v1 = vld [vmem:[#allocation7 + $0x30] sm:$0xff]  ;;  %v1056_v7 = vmov 0.0   ;;  %vm122_vm0 = vcmask 523264  }
  0x17   :  { %137 = vmatpush.msra.mxu0 %v117_v0  ;;  %v115_v2 = vld [vmem:[#allocation7 + $0x28] sm:$0xff]  ;;  %v1138_v4 = vld [vmem:[#allocation9] sm:$0xff]  ;;  %v113_v6 = vld [vmem:[#allocation7 + $0x18] sm:$0xff]  ;;  %s1057_s29 = smov 80   ;;  %s1059_s30 = smov 96   ;;  %vm223_vm5 = vcmask 58368  }
  0x18   :  { %v1136_v3 = vld [vmem:[#allocation9 + $0x8] sm:$0xff]  ;;  %v114_v5 = vld [vmem:[#allocation7 + $0x20] sm:$0xff]  ;;  %v112_v8 = vld [vmem:[#allocation7 + $0x10] sm:$0xff]  ;;  %vm157_vm6 = vcmask 130048   ;;  %vm225_vm7 = vcmask 123968   ;;  %s782_s18 = sshll.u32 %s1246_s8, 4  ;;  %s783_s18 = int_to_ptr.hbm [resolvable:$true] %s782_s18 }
  0x19   :  { %138 = vmatpush.msra.mxu0 %v116_v1  ;;  %175 = vmatpush.msra.mxu2 %v1136_v3  ;;  %v111_v9 = vld [vmem:[#allocation7 + $0x8] sm:$0xff]  ;;  %v110_v10 = vld [vmem:[#allocation7] sm:$0xff]  ;;  %v108_v11 = vld [vmem:[#allocation4] sm:$0xff] }
  0x1a   :  { %311 = vmatpush.msra.mxu3 %v1136_v3  ;;  %378 = vmatpush.msra.mxu1 %v1136_v3  ;;  %v1158_v12 = vld [vmem:[%s1240_s2] ss:$0 sm:$0xff]  ;;  %s1058_s2 = smov 16  }
  0x1b   :  { %139 = vmatpush.msra.mxu0 %v115_v2  ;;  %176 = vmatpush.msra.mxu2 %v1138_v4 }
  0x1c   :  { %312 = vmatpush.msra.mxu3 %v1138_v4  ;;  %177 = vmatmul.f32.vlgmr.msra.gmra.mxu2 %v1056_v7 }
  0x1d   :  { %140 = vmatpush.msra.mxu0 %v114_v5  ;;  %244 = vmatpush.msrb.mxu2 %v1136_v3 }
  0x1e   :  { %379 = vmatpush.msra.mxu1 %v1138_v4  ;;  %512 = vmatpush.msrb.mxu3 %v1136_v3 }
  0x1f   :  { %141 = vmatpush.msra.mxu0 %v113_v6  ;;  %245 = vmatpush.msrb.mxu2 %v1138_v4 }
  0x20   :  { %579 = vmatpush.msrb.mxu1 %v1136_v3  ;;  %513 = vmatpush.msrb.mxu3 %v1138_v4 }
  0x21   :  { %142 = vmatpush.msra.mxu0 %v112_v8  ;;  %445 = vmatpush.msra.mxu2 %v1136_v3 }
  0x22   :  { %580 = vmatpush.msrb.mxu1 %v1138_v4 }
  0x23   :  { %143 = vmatpush.msra.mxu0 %v111_v9  ;;  %446 = vmatpush.msra.mxu2 %v1138_v4 }
  0x25   :  { %144 = vmatpush.msra.mxu0 %v110_v10 }
  0x26   :  { %797 = vmatmul.msk.f32.vlgmr.msra.gmra.mxu0 %vm122_vm0, %v108_v11 }
  0x9f   :  { %v178_v15 = vpop.f32.mrf.mxu2 }
  0xa3   :  { %v146_v13 = vpop.f32.mrf.mxu0 }
  0xa4   :  { %v147_v14 = vadd.f32 %v1158_v12, %v146_v13 }
  0xa6   :  { %152 = vst.msk [vmem:[#allocation2] sm:$0xff] %vm122_vm0, %v147_v14 }
  0xad   :  { %v156_v16 = vld [vmem:[#allocation2] sm:$0x3]  ;;  %v227_v41 = vld [vmem:[#allocation2 + $0x2] sm:$0x3] }
  0xae   :  { %v181_v17 = vadd.f32 %v178_v15, %v156_v16 }
  0xb0   :  { %833 = vtanh.f32 %v181_v17  ;;  %v799_v19 = vmul.f32 -1.442695, %v181_v17 }
  0xb2   :  { %835 = vpow2.f32 %v799_v19 }
  0xb6   :  { %v834_v18 = vpop.eup %833 }
  0xb7   :  { %204 = vrot.lane.b32.xlu0 %v834_v18, %s1057_s29 }
  0xb8   :  { %v836_v20 = vpop.eup %835 }
  0xb9   :  { %v185_v21 = vadd.f32 1.0, %v836_v20 }
  0xbb   :  { %837 = vrcp.f32 %v185_v21  ;;  %v197_v27 = vand.u32 2147483648, %v185_v21  ;;  %vm191_vm2 = vweird.f32 %v185_v21  ;;  %v195_v28 = vand.u32 2147483647, %v185_v21 }
  0xbd   :  { %v198_v30 = vor.u32 1.1754944e-38, %v197_v27  ;;  %vm196_vm4 = vcmp.eq.f32.partialorder %v195_v28, 8.507059e+37 }
  0xc1   :  { %v838_v22 = vpop.eup %837 }
  0xc2   :  { %v187_v23 = vmul.f32 %v838_v22, %v185_v21  ;;  %vm192_vm1 = vweird.f32 %v838_v22 }
  0xc3   :  { %vm193_vm3 = vmor %vm191_vm2, %vm192_vm1 }
  0xc4   :  { %v188_v24 = vsub.f32 1.0, %v187_v23 }
  0xc6   :  { %v189_v25 = vmul.f32 %v838_v22, %v188_v24 }
  0xc8   :  { %v190_v26 = vadd.f32 %v838_v22, %v189_v25 }
  0xca   :  { %v194_v29 = vsel %vm193_vm3, %v838_v22, %v190_v26 }
  0xcb   :  { %v199_v32 = vsel %vm196_vm4, %v198_v30, %v194_v29  ;;  %v361_v30 = vld [vmem:[#allocation2 + $0x6] sm:$0x3] }
  0xcc   :  { %v202_v34 = vmul.f32 0.0, %v199_v32 }
 0x129   :  { %v205_v31 = vpop.permute.xlu0 %204 }
 0x12a   :  { %v207_v33 = vmul.f32 %v205_v31, %v199_v32 }
 0x12c   :  { %209 = vrot.lane.b32.xlu0 %v207_v33, %s1058_s2 }
 0x19e   :  { %v210_v35 = vpop.permute.xlu0 %209 }
 0x19f   :  { %v212_v36 = vadd.f32 %v210_v35, %v202_v34 }
 0x1a1   :  { %839 = vtanh.f32 %v212_v36 }
 0x1a7   :  { %v840_v37 = vpop.eup %839 }
 0x1a8   :  { %215 = vrot.lane.b32.xlu1 %v840_v37, %s1058_s2 }
 0x21a   :  { %v216_v38 = vpop.permute.xlu1 %215 }
 0x21b   :  { %v218_v39 = vmul.f32 %v216_v38, %v199_v32 }
 0x21d   :  { %220 = vrot.lane.b32.xlu1 %v218_v39, %s1059_s30 }
 0x28f   :  { %v221_v40 = vpop.permute.xlu1 %220 }
 0x290   :  { %224 = vst.msk [vmem:[#allocation3] sm:$0x3] %vm223_vm5, %v221_v40  ;;  %800 = vmatmul.msk.f32.vlgmr.msrb.gmra.mxu2 %vm157_vm6, %v221_v40 }
 0x291   :  { %226 = vst.msk [vmem:[#allocation3 + $0xe] sm:$0x3] %vm225_vm7, %v221_v40  ;;  %646 = vmatpush.msrb.mxu2 %v1136_v3  ;;  %v294_v3 = vld [vmem:[#allocation2 + $0x4] sm:$0x3] }
 0x293   :  { %647 = vmatpush.msrb.mxu2 %v1138_v4 }
 0x313   :  { %v247_v42 = vpop.f32.mrf.mxu2 }
 0x314   :  { %v250_v43 = vadd.f32 %v247_v42, %v227_v41 }
 0x316   :  { %841 = vtanh.f32 %v250_v43  ;;  %v801_v45 = vmul.f32 -1.442695, %v250_v43 }
 0x318   :  { %843 = vpow2.f32 %v801_v45 }
 0x31c   :  { %v842_v44 = vpop.eup %841 }
 0x31d   :  { %273 = vrot.lane.b32.xlu2 %v842_v44, %s1057_s29 }
 0x31e   :  { %v844_v46 = vpop.eup %843 }
 0x31f   :  { %v254_v47 = vadd.f32 1.0, %v844_v46 }
 0x321   :  { %845 = vrcp.f32 %v254_v47  ;;  %v266_v53 = vand.u32 2147483648, %v254_v47  ;;  %vm260_vm9 = vweird.f32 %v254_v47  ;;  %v264_v54 = vand.u32 2147483647, %v254_v47 }
 0x323   :  { %v267_v56 = vor.u32 1.1754944e-38, %v266_v53  ;;  %vm265_vm11 = vcmp.eq.f32.partialorder %v264_v54, 8.507059e+37  ;;  %v109_v53 = vld [vmem:[#allocation4 + $0x8] sm:$0xff] }
 0x324   :  { %798 = vmatmul.msk.f32.gmra.mxu0 %vm122_vm0, %v109_v53 }
 0x327   :  { %v846_v48 = vpop.eup %845 }
 0x328   :  { %v256_v49 = vmul.f32 %v846_v48, %v254_v47  ;;  %vm261_vm8 = vweird.f32 %v846_v48 }
 0x329   :  { %vm262_vm10 = vmor %vm260_vm9, %vm261_vm8 }
 0x32a   :  { %v257_v50 = vsub.f32 1.0, %v256_v49 }
 0x32c   :  { %v258_v51 = vmul.f32 %v846_v48, %v257_v50 }
 0x32e   :  { %v259_v52 = vadd.f32 %v846_v48, %v258_v51 }
 0x330   :  { %v263_v55 = vsel %vm262_vm10, %v846_v48, %v259_v52 }
 0x331   :  { %v268_v58 = vsel %vm265_vm11, %v267_v56, %v263_v55 }
 0x332   :  { %v271_v60 = vmul.f32 %v268_v58, %v212_v36 }
 0x377   :  { %v274_v57 = vpop.permute.xlu2 %273 }
 0x378   :  { %v276_v59 = vmul.f32 %v274_v57, %v268_v58 }
 0x37a   :  { %278 = vrot.lane.b32.xlu2 %v276_v59, %s1058_s2 }
 0x3a1   :  { %v149_v56 = vpop.f32.mrf.mxu0 }
 0x3a2   :  { %v150_v57 = vadd.f32 %v1158_v12, %v149_v56 }
 0x3a4   :  { %153 = vst.msk [vmem:[#allocation2 + $0x8] sm:$0xff] %vm122_vm0, %v150_v57 }
 0x3ab   :  { %v428_v59 = vld [vmem:[#allocation2 + $0x8] sm:$0x3] }
 0x3d4   :  { %v279_v61 = vpop.permute.xlu2 %278 }
 0x3d5   :  { %v281_v62 = vadd.f32 %v279_v61, %v271_v60 }
 0x3d7   :  { %847 = vtanh.f32 %v281_v62 }
 0x3dd   :  { %v848_v63 = vpop.eup %847 }
 0x3de   :  { %284 = vrot.lane.b32.xlu0 %v848_v63, %s1058_s2 }
 0x450   :  { %v285_v0 = vpop.permute.xlu0 %284 }
 0x451   :  { %v287_v1 = vmul.f32 %v285_v0, %v268_v58 }
 0x453   :  { %289 = vrot.lane.b32.xlu1 %v287_v1, %s1059_s30 }
 0x4c5   :  { %v290_v2 = vpop.permute.xlu1 %289 }
 0x4c6   :  { %292 = vst.msk [vmem:[#allocation3 + $0x2] sm:$0x3] %vm223_vm5, %v290_v2  ;;  %802 = vmatmul.msk.f32.vlgmr.msra.gmra.mxu3 %vm157_vm6, %v290_v2 }
 0x4c7   :  { %293 = vst.msk [vmem:[#allocation3 + $0xc] sm:$0x3] %vm225_vm7, %v290_v2 }
 0x549   :  { %v314_v4 = vpop.f32.mrf.mxu3 }
 0x54a   :  { %v317_v5 = vadd.f32 %v314_v4, %v294_v3 }
 0x54c   :  { %849 = vtanh.f32 %v317_v5  ;;  %v803_v7 = vmul.f32 -1.442695, %v317_v5 }
 0x54e   :  { %851 = vpow2.f32 %v803_v7 }
 0x552   :  { %v850_v6 = vpop.eup %849 }
 0x553   :  { %340 = vrot.lane.b32.xlu2 %v850_v6, %s1057_s29 }
 0x554   :  { %v852_v8 = vpop.eup %851 }
 0x555   :  { %v321_v9 = vadd.f32 1.0, %v852_v8 }
 0x557   :  { %853 = vrcp.f32 %v321_v9  ;;  %v333_v16 = vand.u32 2147483648, %v321_v9  ;;  %vm327_vm13 = vweird.f32 %v321_v9  ;;  %v331_v17 = vand.u32 2147483647, %v321_v9 }
 0x559   :  { %v334_v19 = vor.u32 1.1754944e-38, %v333_v16  ;;  %vm332_vm15 = vcmp.eq.f32.partialorder %v331_v17, 8.507059e+37 }
 0x55d   :  { %v854_v10 = vpop.eup %853 }
 0x55e   :  { %v323_v11 = vmul.f32 %v854_v10, %v321_v9  ;;  %vm328_vm12 = vweird.f32 %v854_v10 }
 0x55f   :  { %vm329_vm14 = vmor %vm327_vm13, %vm328_vm12 }
 0x560   :  { %v324_v13 = vsub.f32 1.0, %v323_v11 }
 0x562   :  { %v325_v14 = vmul.f32 %v854_v10, %v324_v13 }
 0x564   :  { %v326_v15 = vadd.f32 %v854_v10, %v325_v14 }
 0x566   :  { %v330_v18 = vsel %vm329_vm14, %v854_v10, %v326_v15 }
 0x567   :  { %v335_v21 = vsel %vm332_vm15, %v334_v19, %v330_v18 }
 0x568   :  { %v338_v23 = vmul.f32 %v335_v21, %v281_v62 }
 0x5ad   :  { %v341_v20 = vpop.permute.xlu2 %340 }
 0x5ae   :  { %v343_v22 = vmul.f32 %v341_v20, %v335_v21 }
 0x5b0   :  { %345 = vrot.lane.b32.xlu0 %v343_v22, %s1058_s2 }
 0x622   :  { %v346_v24 = vpop.permute.xlu0 %345 }
 0x623   :  { %v348_v25 = vadd.f32 %v346_v24, %v338_v23 }
 0x625   :  { %855 = vtanh.f32 %v348_v25 }
 0x62b   :  { %v856_v26 = vpop.eup %855 }
 0x62c   :  { %351 = vrot.lane.b32.xlu1 %v856_v26, %s1058_s2 }
 0x69e   :  { %v352_v27 = vpop.permute.xlu1 %351 }
 0x69f   :  { %v354_v28 = vmul.f32 %v352_v27, %v335_v21  ;;  %v495_v21 = vld [vmem:[#allocation2 + $0xa] sm:$0x3] }
 0x6a1   :  { %356 = vrot.lane.b32.xlu2 %v354_v28, %s1059_s30 }
 0x6fb   :  { %v357_v29 = vpop.permute.xlu2 %356 }
 0x6fc   :  { %359 = vst.msk [vmem:[#allocation3 + $0x4] sm:$0x3] %vm223_vm5, %v357_v29  ;;  %804 = vmatmul.msk.f32.vlgmr.msra.gmra.mxu1 %vm157_vm6, %v357_v29 }
 0x6fd   :  { %360 = vst.msk [vmem:[#allocation3 + $0xa] sm:$0x3] %vm225_vm7, %v357_v29 }
 0x779   :  { %v381_v31 = vpop.f32.mrf.mxu1 }
 0x77a   :  { %v384_v32 = vadd.f32 %v381_v31, %v361_v30 }
 0x77c   :  { %857 = vtanh.f32 %v384_v32  ;;  %v805_v34 = vmul.f32 -1.442695, %v384_v32 }
 0x77e   :  { %859 = vpow2.f32 %v805_v34 }
 0x782   :  { %v858_v33 = vpop.eup %857 }
 0x783   :  { %407 = vrot.lane.b32.xlu0 %v858_v33, %s1057_s29 }
 0x784   :  { %v860_v35 = vpop.eup %859 }
 0x785   :  { %v388_v36 = vadd.f32 1.0, %v860_v35 }
 0x787   :  { %861 = vrcp.f32 %v388_v36  ;;  %v400_v42 = vand.u32 2147483648, %v388_v36  ;;  %vm394_vm2 = vweird.f32 %v388_v36  ;;  %v398_v43 = vand.u32 2147483647, %v388_v36 }
 0x789   :  { %v401_v45 = vor.u32 1.1754944e-38, %v400_v42  ;;  %vm399_vm4 = vcmp.eq.f32.partialorder %v398_v43, 8.507059e+37 }
 0x78d   :  { %v862_v37 = vpop.eup %861 }
 0x78e   :  { %v390_v38 = vmul.f32 %v862_v37, %v388_v36  ;;  %vm395_vm1 = vweird.f32 %v862_v37 }
 0x78f   :  { %vm396_vm3 = vmor %vm394_vm2, %vm395_vm1 }
 0x790   :  { %v391_v39 = vsub.f32 1.0, %v390_v38 }
 0x792   :  { %v392_v40 = vmul.f32 %v862_v37, %v391_v39 }
 0x794   :  { %v393_v41 = vadd.f32 %v862_v37, %v392_v40 }
 0x796   :  { %v397_v44 = vsel %vm396_vm3, %v862_v37, %v393_v41 }
 0x797   :  { %v402_v47 = vsel %vm399_vm4, %v401_v45, %v397_v44 }
 0x798   :  { %v405_v49 = vmul.f32 %v402_v47, %v348_v25 }
 0x7f5   :  { %v408_v46 = vpop.permute.xlu0 %407 }
 0x7f6   :  { %v410_v48 = vmul.f32 %v408_v46, %v402_v47 }
 0x7f8   :  { %412 = vrot.lane.b32.xlu1 %v410_v48, %s1058_s2 }
 0x86a   :  { %v413_v50 = vpop.permute.xlu1 %412 }
 0x86b   :  { %v415_v51 = vadd.f32 %v413_v50, %v405_v49 }
 0x86d   :  { %863 = vtanh.f32 %v415_v51 }
 0x873   :  { %v864_v52 = vpop.eup %863 }
 0x874   :  { %418 = vrot.lane.b32.xlu2 %v864_v52, %s1058_s2 }
 0x8ce   :  { %v419_v54 = vpop.permute.xlu2 %418 }
 0x8cf   :  { %v421_v55 = vmul.f32 %v419_v54, %v402_v47  ;;  %v562_v47 = vld [vmem:[#allocation2 + $0xc] sm:$0x3] }
 0x8d1   :  { %423 = vrot.lane.b32.xlu0 %v421_v55, %s1059_s30 }
 0x943   :  { %v424_v58 = vpop.permute.xlu0 %423 }
 0x944   :  { %426 = vst.msk [vmem:[#allocation3 + $0x6] sm:$0x3] %vm223_vm5, %v424_v58  ;;  %806 = vmatmul.msk.f32.vlgmr.msra.gmra.mxu2 %vm157_vm6, %v424_v58 }
 0x945   :  { %427 = vst.msk [vmem:[#allocation3 + $0x8] sm:$0x3] %vm225_vm7, %v424_v58 }
 0x9c7   :  { %v448_v60 = vpop.f32.mrf.mxu2 }
 0x9c8   :  { %v451_v61 = vadd.f32 %v448_v60, %v428_v59 }
 0x9ca   :  { %865 = vtanh.f32 %v451_v61  ;;  %v807_v63 = vmul.f32 -1.442695, %v451_v61 }
 0x9cc   :  { %867 = vpow2.f32 %v807_v63 }
 0x9d0   :  { %v866_v62 = vpop.eup %865 }
 0x9d1   :  { %474 = vrot.lane.b32.xlu1 %v866_v62, %s1057_s29 }
 0x9d2   :  { %v868_v0 = vpop.eup %867 }
 0x9d3   :  { %v455_v12 = vadd.f32 1.0, %v868_v0 }
 0x9d5   :  { %869 = vrcp.f32 %v455_v12  ;;  %v467_v6 = vand.u32 2147483648, %v455_v12  ;;  %vm461_vm8 = vweird.f32 %v455_v12  ;;  %v465_v7 = vand.u32 2147483647, %v455_v12 }
 0x9d7   :  { %v468_v9 = vor.u32 1.1754944e-38, %v467_v6  ;;  %vm466_vm10 = vcmp.eq.f32.partialorder %v465_v7, 8.507059e+37 }
 0x9db   :  { %v870_v1 = vpop.eup %869 }
 0x9dc   :  { %v457_v2 = vmul.f32 %v870_v1, %v455_v12  ;;  %vm462_vm0 = vweird.f32 %v870_v1 }
 0x9dd   :  { %vm463_vm9 = vmor %vm461_vm8, %vm462_vm0 }
 0x9de   :  { %v458_v3 = vsub.f32 1.0, %v457_v2 }
 0x9e0   :  { %v459_v4 = vmul.f32 %v870_v1, %v458_v3 }
 0x9e2   :  { %v460_v5 = vadd.f32 %v870_v1, %v459_v4 }
 0x9e4   :  { %v464_v8 = vsel %vm463_vm9, %v870_v1, %v460_v5 }
 0x9e5   :  { %v469_v11 = vsel %vm466_vm10, %v468_v9, %v464_v8  ;;  %v629_v8 = vld [vmem:[#allocation2 + $0xe] sm:$0x3] }
 0x9e6   :  { %v472_v14 = vmul.f32 %v469_v11, %v415_v51 }
 0xa43   :  { %v475_v10 = vpop.permute.xlu1 %474 }
 0xa44   :  { %v477_v13 = vmul.f32 %v475_v10, %v469_v11 }
 0xa46   :  { %479 = vrot.lane.b32.xlu2 %v477_v13, %s1058_s2 }
 0xaa0   :  { %v480_v15 = vpop.permute.xlu2 %479 }
 0xaa1   :  { %v482_v16 = vadd.f32 %v480_v15, %v472_v14 }
 0xaa3   :  { %871 = vtanh.f32 %v482_v16 }
 0xaa9   :  { %v872_v17 = vpop.eup %871 }
 0xaaa   :  { %485 = vrot.lane.b32.xlu0 %v872_v17, %s1058_s2 }
 0xb1c   :  { %v486_v18 = vpop.permute.xlu0 %485 }
 0xb1d   :  { %v488_v19 = vmul.f32 %v486_v18, %v469_v11 }
 0xb1f   :  { %490 = vrot.lane.b32.xlu1 %v488_v19, %s1059_s30 }
 0xb91   :  { %v491_v20 = vpop.permute.xlu1 %490 }
 0xb92   :  { %493 = vst.msk [vmem:[#allocation3 + $0x8] sm:$0x3] %vm223_vm5, %v491_v20  ;;  %808 = vmatmul.msk.f32.vlgmr.msrb.gmra.mxu3 %vm157_vm6, %v491_v20 }
 0xb93   :  { %494 = vst.msk [vmem:[#allocation3 + $0x6] sm:$0x3] %vm225_vm7, %v491_v20 }
 0xc15   :  { %v515_v22 = vpop.f32.mrf.mxu3 }
 0xc16   :  { %v518_v23 = vadd.f32 %v515_v22, %v495_v21 }
 0xc18   :  { %873 = vtanh.f32 %v518_v23  ;;  %v809_v25 = vmul.f32 -1.442695, %v518_v23 }
 0xc1a   :  { %875 = vpow2.f32 %v809_v25 }
 0xc1e   :  { %v874_v24 = vpop.eup %873 }
 0xc1f   :  { %541 = vrot.lane.b32.xlu2 %v874_v24, %s1057_s29 }
 0xc20   :  { %v876_v26 = vpop.eup %875 }
 0xc21   :  { %v522_v27 = vadd.f32 1.0, %v876_v26 }
 0xc23   :  { %877 = vrcp.f32 %v522_v27  ;;  %v534_v33 = vand.u32 2147483648, %v522_v27  ;;  %vm528_vm12 = vweird.f32 %v522_v27  ;;  %v532_v34 = vand.u32 2147483647, %v522_v27 }
 0xc25   :  { %v535_v36 = vor.u32 1.1754944e-38, %v534_v33  ;;  %vm533_vm14 = vcmp.eq.f32.partialorder %v532_v34, 8.507059e+37  ;;  %v699_v34 = vld [vmem:[#allocation10 + $0x8] sm:$0xff] }
 0xc26   :  { %724 = vmatpush.msra.mxu3 %v699_v34 }
 0xc29   :  { %v878_v28 = vpop.eup %877 }
 0xc2a   :  { %v524_v29 = vmul.f32 %v878_v28, %v522_v27  ;;  %vm529_vm11 = vweird.f32 %v878_v28 }
 0xc2b   :  { %vm530_vm13 = vmor %vm528_vm12, %vm529_vm11 }
 0xc2c   :  { %v525_v30 = vsub.f32 1.0, %v524_v29 }
 0xc2e   :  { %v526_v31 = vmul.f32 %v878_v28, %v525_v30 }
 0xc30   :  { %v527_v32 = vadd.f32 %v878_v28, %v526_v31 }
 0xc32   :  { %v531_v35 = vsel %vm530_vm13, %v878_v28, %v527_v32 }
 0xc33   :  { %v536_v38 = vsel %vm533_vm14, %v535_v36, %v531_v35  ;;  %v698_v35 = vld [vmem:[#allocation10] sm:$0xff]  ;;  %v740_v36 = vld [vmem:[#allocation12 + $0x8] sm:$0xff] }
 0xc34   :  { %v539_v40 = vmul.f32 %v536_v38, %v482_v16  ;;  %725 = vmatpush.msra.mxu3 %v698_v35  ;;  %765 = vmatpush.msra.mxu1 %v740_v36 }
 0xc79   :  { %v542_v37 = vpop.permute.xlu2 %541 }
 0xc7a   :  { %v544_v39 = vmul.f32 %v542_v37, %v536_v38 }
 0xc7c   :  { %546 = vrot.lane.b32.xlu0 %v544_v39, %s1058_s2 }
 0xcee   :  { %v547_v41 = vpop.permute.xlu0 %546 }
 0xcef   :  { %v549_v42 = vadd.f32 %v547_v41, %v539_v40  ;;  %v739_v40 = vld [vmem:[#allocation12] sm:$0xff]  ;;  %v831_v41 = vld [vmem:[%s1243_s5] ss:$0 sm:$0xff]  ;;  %s1060_s5 = smov [#allocation13]  }
 0xcf0   :  { %766 = vmatpush.msra.mxu1 %v739_v40  ;;  %s780_s15 = sshll.u32 %s1060_s5, 4  ;;  %s781_s15 = int_to_ptr.vmem [resolvable:$true] %s780_s15 }
 0xcf1   :  { %879 = vtanh.f32 %v549_v42 }
 0xcf7   :  { %v880_v43 = vpop.eup %879 }
 0xcf8   :  { %552 = vrot.lane.b32.xlu1 %v880_v43, %s1058_s2 }
 0xd6a   :  { %v553_v44 = vpop.permute.xlu1 %552 }
 0xd6b   :  { %v555_v45 = vmul.f32 %v553_v44, %v536_v38 }
 0xd6d   :  { %557 = vrot.lane.b32.xlu2 %v555_v45, %s1059_s30 }
 0xdc7   :  { %v558_v46 = vpop.permute.xlu2 %557 }
 0xdc8   :  { %560 = vst.msk [vmem:[#allocation3 + $0xa] sm:$0x3] %vm223_vm5, %v558_v46  ;;  %810 = vmatmul.msk.f32.vlgmr.msrb.gmra.mxu1 %vm157_vm6, %v558_v46 }
 0xdc9   :  { %561 = vst.msk [vmem:[#allocation3 + $0x4] sm:$0x3] %vm225_vm7, %v558_v46 }
 0xe45   :  { %v582_v48 = vpop.f32.mrf.mxu1 }
 0xe46   :  { %v585_v49 = vadd.f32 %v582_v48, %v562_v47 }
 0xe48   :  { %881 = vtanh.f32 %v585_v49  ;;  %v811_v51 = vmul.f32 -1.442695, %v585_v49 }
 0xe4a   :  { %883 = vpow2.f32 %v811_v51 }
 0xe4e   :  { %v882_v50 = vpop.eup %881 }
 0xe4f   :  { %608 = vrot.lane.b32.xlu0 %v882_v50, %s1057_s29  ;;  %v832_v50 = vld [vmem:[%s1245_s7] ss:$0 sm:$0xff] }
 0xe50   :  { %v884_v52 = vpop.eup %883 }
 0xe51   :  { %v589_v53 = vadd.f32 1.0, %v884_v52 }
 0xe53   :  { %885 = vrcp.f32 %v589_v53  ;;  %v601_v59 = vand.u32 2147483648, %v589_v53  ;;  %vm595_vm1 = vweird.f32 %v589_v53  ;;  %v599_v60 = vand.u32 2147483647, %v589_v53 }
 0xe55   :  { %v602_v62 = vor.u32 1.1754944e-38, %v601_v59  ;;  %vm600_vm3 = vcmp.eq.f32.partialorder %v599_v60, 8.507059e+37 }
 0xe59   :  { %v886_v54 = vpop.eup %885 }
 0xe5a   :  { %v591_v55 = vmul.f32 %v886_v54, %v589_v53  ;;  %vm596_vm15 = vweird.f32 %v886_v54 }
 0xe5b   :  { %vm597_vm2 = vmor %vm595_vm1, %vm596_vm15 }
 0xe5c   :  { %v592_v56 = vsub.f32 1.0, %v591_v55 }
 0xe5e   :  { %v593_v57 = vmul.f32 %v886_v54, %v592_v56 }
 0xe60   :  { %v594_v58 = vadd.f32 %v886_v54, %v593_v57 }
 0xe62   :  { %v598_v61 = vsel %vm597_vm2, %v886_v54, %v594_v58 }
 0xe63   :  { %v603_v0 = vsel %vm600_vm3, %v602_v62, %v598_v61 }
 0xe64   :  { %v606_v1 = vmul.f32 %v603_v0, %v549_v42 }
 0xec1   :  { %v609_v63 = vpop.permute.xlu0 %608 }
 0xec2   :  { %v611_v12 = vmul.f32 %v609_v63, %v603_v0 }
 0xec4   :  { %613 = vrot.lane.b32.xlu1 %v611_v12, %s1058_s2 }
 0xf36   :  { %v614_v2 = vpop.permute.xlu1 %613 }
 0xf37   :  { %v616_v3 = vadd.f32 %v614_v2, %v606_v1 }
 0xf39   :  { %887 = vtanh.f32 %v616_v3 }
 0xf3f   :  { %v888_v4 = vpop.eup %887 }
 0xf40   :  { %619 = vrot.lane.b32.xlu2 %v888_v4, %s1058_s2 }
 0xf9a   :  { %v620_v5 = vpop.permute.xlu2 %619 }
 0xf9b   :  { %v622_v6 = vmul.f32 %v620_v5, %v603_v0 }
 0xf9d   :  { %624 = vrot.lane.b32.xlu0 %v622_v6, %s1059_s30 }
0x100f   :  { %v625_v7 = vpop.permute.xlu0 %624 }
0x1010   :  { %627 = vst.msk [vmem:[#allocation3 + $0xc] sm:$0x3] %vm223_vm5, %v625_v7  ;;  %812 = vmatmul.msk.f32.vlgmr.msrb.gmra.mxu2 %vm157_vm6, %v625_v7 }
0x1011   :  { %628 = vst.msk [vmem:[#allocation3 + $0x2] sm:$0x3] %vm225_vm7, %v625_v7 }
0x1093   :  { %v649_v9 = vpop.f32.mrf.mxu2 }
0x1094   :  { %v652_v10 = vadd.f32 %v649_v9, %v629_v8 }
0x1096   :  { %889 = vtanh.f32 %v652_v10  ;;  %v813_v13 = vmul.f32 -1.442695, %v652_v10 }
0x1098   :  { %891 = vpow2.f32 %v813_v13 }
0x109c   :  { %v890_v11 = vpop.eup %889 }
0x109d   :  { %675 = vrot.lane.b32.xlu1 %v890_v11, %s1057_s29 }
0x109e   :  { %v892_v14 = vpop.eup %891 }
0x109f   :  { %v656_v15 = vadd.f32 1.0, %v892_v14 }
0x10a1   :  { %893 = vrcp.f32 %v656_v15  ;;  %v668_v21 = vand.u32 2147483648, %v656_v15  ;;  %vm662_vm0 = vweird.f32 %v656_v15  ;;  %v666_v22 = vand.u32 2147483647, %v656_v15 }
0x10a3   :  { %v669_v24 = vor.u32 1.1754944e-38, %v668_v21  ;;  %vm667_vm9 = vcmp.eq.f32.partialorder %v666_v22, 8.507059e+37 }
0x10a7   :  { %v894_v16 = vpop.eup %893 }
0x10a8   :  { %v658_v17 = vmul.f32 %v894_v16, %v656_v15  ;;  %vm663_vm4 = vweird.f32 %v894_v16 }
0x10a9   :  { %vm664_vm8 = vmor %vm662_vm0, %vm663_vm4 }
0x10aa   :  { %v659_v18 = vsub.f32 1.0, %v658_v17 }
0x10ac   :  { %v660_v19 = vmul.f32 %v894_v16, %v659_v18 }
0x10ae   :  { %v661_v20 = vadd.f32 %v894_v16, %v660_v19 }
0x10b0   :  { %v665_v23 = vsel %vm664_vm8, %v894_v16, %v661_v20 }
0x10b1   :  { %v670_v26 = vsel %vm667_vm9, %v669_v24, %v665_v23 }
0x10b2   :  { %v673_v28 = vmul.f32 %v670_v26, %v616_v3 }
0x110f   :  { %v676_v25 = vpop.permute.xlu1 %675 }
0x1110   :  { %v678_v27 = vmul.f32 %v676_v25, %v670_v26 }
0x1112   :  { %680 = vrot.lane.b32.xlu2 %v678_v27, %s1058_s2 }
0x116c   :  { %v681_v29 = vpop.permute.xlu2 %680 }
0x116d   :  { %v683_v30 = vadd.f32 %v681_v29, %v673_v28 }
0x116f   :  { %895 = vtanh.f32 %v683_v30 }
0x1175   :  { %v896_v31 = vpop.eup %895 }
0x1176   :  { %686 = vrot.lane.b32.xlu0 %v896_v31, %s1058_s2 }
0x11e8   :  { %v687_v32 = vpop.permute.xlu0 %686 }
0x11e9   :  { %v689_v33 = vmul.f32 %v687_v32, %v670_v26 }
0x11eb   :  { %691 = vrot.lane.b32.xlu1 %v689_v33, %s1059_s30 }
0x125d   :  { %v692_v37 = vpop.permute.xlu1 %691 }
0x125e   :  { %694 = vst.msk [vmem:[#allocation3 + $0xe] sm:$0x3] %vm223_vm5, %v692_v37 }
0x125f   :  { %695 = vst.msk [vmem:[#allocation3] sm:$0x3] %vm225_vm7, %v692_v37 }
0x1265   :  { %v697_v39 = vld [vmem:[#allocation3 + $0x8] sm:$0xff] }
0x1266   :  { %v696_v38 = vld [vmem:[#allocation3] sm:$0xff] }
0x1267   :  { %814 = vmatmul.msk.f32.vlgmr.msra.gmra.mxu3 %vm157_vm6, %v696_v38 }
0x126f   :  { %815 = vmatmul.msk.f32.gmra.mxu3 %vm157_vm6, %v697_v39 }
0x12ea   :  { %v727_v42 = vpop.f32.mrf.mxu3 }
0x12eb   :  { %v728_v43 = vadd.f32 %v831_v41, %v727_v42 }
0x12ed   :  { %vm733_vm10 = vcmp.gt.f32.partialorder %v728_v43, 0.0  ;;  %v735_v44 = vmul.f32 0.01, %v728_v43 }
0x12ef   :  { %v737_v45 = vsel %vm733_vm10, %v728_v43, %v735_v44 }
0x12f0   :  { %816 = vmatmul.msk.f32.vlgmr.msra.gmra.mxu1 %vm157_vm6, %v737_v45 }
0x12f2   :  { %v730_v46 = vpop.f32.mrf.mxu3 }
0x12f3   :  { %v731_v47 = vadd.f32 %v831_v41, %v730_v46 }
0x12f5   :  { %v736_v48 = vmul.f32 0.01, %v731_v47  ;;  %vm734_vm5 = vcmp.gt.f32.partialorder %v731_v47, 0.0 }
0x12f7   :  { %v738_v49 = vsel %vm734_vm5, %v731_v47, %v736_v48 }
0x12f8   :  { %817 = vmatmul.msk.f32.gmra.mxu1 %vm157_vm6, %v738_v49 }
0x136d   :  { %v768_v51 = vpop.f32.mrf.mxu1 }
0x136e   :  { %v769_v52 = vadd.f32 %v832_v50, %v768_v51 }
0x1370   :  { %774 = vst [vmem:[#allocation13] sm:$0xff] %v769_v52 }
0x1375   :  { %v771_v53 = vpop.f32.mrf.mxu1 }
0x1376   :  { %v772_v54 = vadd.f32 %v832_v50, %v771_v53 }
0x1378   :  { %775 = vst [vmem:[#allocation13 + $0x8] sm:$0xff] %v772_v54 }
0x1379   :  { %788 = dma.vmem_to_hbm [thread:$0]  %s781_s15, 256, %s783_s18, [#allocation6], %s1050_s13, %s1050_s13, %s1051_s14  }
0x137a   :  { %1047 = dma.done.wait [#allocation6], 256  }
0x137b   :  { %1048 = vsyncadd [#allocation6], 4294967040 }
0x137c   :  { %793 = vsyncpa [#allocation5], 1 }
0x137d   :  { %794 = vsyncpa [#allocation8], 1 }
0x137e   :  { %795 = vsyncpa [#allocation11], 1 }
0x137f   :  { %796 = vsyncpa [#allocation6], 1 }

</bundles_post_ra>
